<compile_context>
chip_gen: v7x
topology: tpu7x:2x2x1
jax: 0.10.0
libtpu: 0.0.40
codegen_flags: <defaults>
</compile_context>

<pallas_src>
import jax
import jax.numpy as jnp
from jax.experimental import pallas as pl
from jax.experimental.pallas import tpu as pltpu


def _avgpool_kernel(x_ref, m_ref, o_ref):
    """o = x @ m.

    x_ref: (TR, G*2*W) grouped input rows.
    m_ref: (G*2*W, G*Wo) constant pooling matrix (0.25 at contributing taps).
    One matmul performs both the vertical and the horizontal pair reduction.
    Precision HIGHEST keeps the f32 inputs un-truncated on the MXU.
    """
    o_ref[...] = jnp.dot(
        x_ref[...],
        m_ref[...],
        precision=jax.lax.Precision.HIGHEST,
        preferred_element_type=jnp.float32,
    ).astype(o_ref.dtype)


def _pick_group(n_rows, wo):
    """Smallest divisor g of n_rows such that g*wo >= 128 (lane-dense blocks).

    Keeping g minimal keeps the pooling matrix tiny and the MXU work per HBM
    byte (~g*wo/2 flop/byte) well below the HBM-roofline crossover.
    """
    if wo >= 128 or n_rows <= 1:
        return 1
    best = 1
    for g in range(1, min(n_rows, 256) + 1):
        if n_rows % g:
            continue
        best = g
        if g * wo >= 128:
            break
    return best


def _pick_row_tile(n_rows, row_bytes, target_bytes=2 * 1024 * 1024):
    """Largest multiple-of-8 divisor of n_rows with <= ~target_bytes per block.

    ~2 MiB input blocks keep the double-buffered pipeline working set under the
    scoped-VMEM defaults of v5e (16 MiB) and v6e/v7x (32 MiB), while each grid
    step stays far above the ~0.35 us/step overhead.
    """
    if n_rows <= 8 or n_rows % 8:
        return n_rows  # full extent is always a legal 2nd-minor block dim
    cap = max(8, min(n_rows, (target_bytes // max(row_bytes, 1)) // 8 * 8))
    for t in range(cap, 7, -8):
        if n_rows % t == 0:
            return t
    return n_rows


@jax.jit
def avg_pool2d_2x2(x):
    """nn.AvgPool2d(kernel_size=2, stride=2) on an NCHW tensor via Pallas."""
    N, C, H, W = x.shape
    assert H % 2 == 0 and W % 2 == 0, "H and W must be even for 2x2/stride-2 pooling"
    Ho, Wo = H // 2, W // 2

    n_out_rows = N * C * Ho              # one logical row per (n, c, ho)
    G = _pick_group(n_out_rows, Wo)      # output rows packed per lane slab
    R = n_out_rows // G
    Kin = G * 2 * W                      # lanes per grouped input row
    Kout = G * Wo                        # lanes per grouped output row

    # Free, contiguous view of the NCHW tensor (no data movement, no extra HBM pass).
    x2 = x.reshape(R, Kin)

    # Constant block-diagonal pooling matrix: input lane i = (g, dr, w) feeds
    # output lane j = (g, wo) with weight 0.25 iff same group g and w // 2 == wo.
    ii = jnp.arange(Kin, dtype=jnp.int32)[:, None]
    jj = jnp.arange(Kout, dtype=jnp.int32)[None, :]
    pool_mat = jnp.where(
        (ii // (2 * W) == jj // Wo) & ((ii % W) // 2 == (jj % Wo)), 0.25, 0.0
    ).astype(x.dtype)

    itemsize = x.dtype.itemsize
    TR = _pick_row_tile(R, Kin * itemsize)
    grid = (R // TR,)

    out2 = pl.pallas_call(
        _avgpool_kernel,
        out_shape=jax.ShapeDtypeStruct((R, Kout), x.dtype),
        grid_spec=pltpu.PrefetchScalarGridSpec(
            num_scalar_prefetch=0,
            grid=grid,
            in_specs=[
                pl.BlockSpec((TR, Kin), lambda i: (i, 0)),
                pl.BlockSpec((Kin, Kout), lambda i: (0, 0)),  # constant -> fetched once
            ],
            out_specs=pl.BlockSpec((TR, Kout), lambda i: (i, 0)),
        ),
        compiler_params=pltpu.CompilerParams(
            dimension_semantics=("parallel",),   # megacore-shardable on v7x
            vmem_limit_bytes=32 * 1024 * 1024,
        ),
        cost_estimate=pl.CostEstimate(
            flops=4 * N * C * Ho * Wo,
            transcendentals=0,
            bytes_accessed=(x.size + N * C * Ho * Wo) * itemsize,
        ),
    )(x2, pool_mat)

    # Free contiguous reshape back to the NCHW output layout.
    return out2.reshape(N, C, Ho, Wo)


if __name__ == "__main__":
    key = jax.random.PRNGKey(0)
    N, C, H, W = 2, 4, 16, 16
    # bf16-exact f32 values keep the reference comparison independent of the
    # MXU pass count while still exercising the full f32 data path.
    x = jax.random.normal(key, (N, C, H, W), dtype=jnp.float32)
    x = x.astype(jnp.bfloat16).astype(jnp.float32)

    out = jax.block_until_ready(avg_pool2d_2x2(x))

    # Pure-JAX reference: mean over each non-overlapping 2x2 window.
    ref = x.reshape(N, C, H // 2, 2, W // 2, 2).mean(axis=(3, 5))
    assert out.shape == (N, C, H // 2, W // 2)
    assert out.dtype == x.dtype
    assert jnp.allclose(out, ref, atol=1e-5, rtol=1e-5), float(
        jnp.max(jnp.abs(out - ref))
    )

    print("KERNEL_OK")
</pallas_src>

<mosaic_0001>
module attributes {stable_mosaic.version = 11 : i64} {
  func.func @_avgpool_kernel(%arg0: i32, %arg1: memref<4x512xf32, #tpu.memory_space<vmem>>, %arg2: memref<512x128xf32, #tpu.memory_space<vmem>>, %arg3: memref<4x128xf32, #tpu.memory_space<vmem>>) attributes {dimension_semantics = [#tpu.dimension_semantics<parallel>], iteration_bounds = array<i64: 1>, scalar_prefetch = 0 : i64, scratch_operands = 0 : i64, tpu.core_type = #tpu.core_type<tc>, window_params = [{transform_indices = @transform_0, window_bounds = array<i64: 4, 512>}, {pipeline_mode = #tpu.pipeline_mode<synchronous>, transform_indices = @transform_1, window_bounds = array<i64: 512, 128>}, {transform_indices = @transform_2, window_bounds = array<i64: 4, 128>}]} {
    %c0 = arith.constant 0 : index
    %c0_0 = arith.constant 0 : index
    %0 = vector.load %arg1[%c0, %c0_0] : memref<4x512xf32, #tpu.memory_space<vmem>>, vector<4x512xf32>
    %c0_1 = arith.constant 0 : index
    %c0_2 = arith.constant 0 : index
    %1 = vector.load %arg2[%c0_1, %c0_2] : memref<512x128xf32, #tpu.memory_space<vmem>>, vector<512x128xf32>
    %cst = arith.constant dense<0.000000e+00> : vector<4x128xf32>
    %2 = tpu.matmul %0, %1, %cst {dimension_numbers = #tpu.dot_dimension_numbers<[1], [0], [0], [1], [0, 0, 1, 1], [], []>, precision = #tpu.contract_precision<fp32>} : vector<4x512xf32>, vector<512x128xf32>, vector<4x128xf32> -> vector<4x128xf32>
    %c0_3 = arith.constant 0 : index
    %c0_4 = arith.constant 0 : index
    %3 = vector.load %arg3[%c0_3, %c0_4] : memref<4x128xf32, #tpu.memory_space<vmem>>, vector<4x128xf32>
    tpu.vector_store %arg3[%c0_3, %c0_4], %2 {strides = array<i32>} : memref<4x128xf32, #tpu.memory_space<vmem>>, vector<4x128xf32>,
    return
  }
  func.func @transform_0(%arg0: i32) -> (i32, i32) {
    %c0_i32 = arith.constant 0 : i32
    %c0_i32_0 = arith.constant 0 : i32
    return %arg0, %c0_i32 : i32, i32
  }
  func.func @transform_1(%arg0: i32) -> (i32, i32) {
    %c0_i32 = arith.constant 0 : i32
    %c0_i32_0 = arith.constant 0 : i32
    %c0_i32_1 = arith.constant 0 : i32
    return %c0_i32, %c0_i32_0 : i32, i32
  }
  func.func @transform_2(%arg0: i32) -> (i32, i32) {
    %c0_i32 = arith.constant 0 : i32
    %c0_i32_0 = arith.constant 0 : i32
    return %arg0, %c0_i32 : i32, i32
  }
}

</mosaic_0001>

<bundles_post_ra>
// kernel: avg_pool2d_2x2.1
= control target key start
LH: loop header
LB: loop body
LE: loop exit
PB: predicated region body
PF: predicated region fallthrough
CT: control target
= control target key end

     0   :  { %s3737_s1 = inlined_call_operand.vmem [shape: f32[512,128], index: 1, kind: input, shape index: {}]   ;;  %s3738_s0 = inlined_call_operand.vmem [shape: f32[4,512], index: 0, kind: input, shape index: {}]   ;;  %s3739_s2 = inlined_call_operand.vmem [shape: f32[4,128], index: 2, kind: output, shape index: {}]  }
   0x1   :  { %v29_v0 = vld [vmem:[%s3737_s1 + $0x80] sm:$0xff]  ;;  %v30_v1 = vld [vmem:[%s3737_s1 + $0x88] sm:$0xff]  ;;  %v31_v7 = vld [vmem:[%s3737_s1 + $0x90] sm:$0xff] }
   0x2   :  { %v13_v2 = vld [vmem:[%s3737_s1] sm:$0xff]  ;;  %v132_v3 = vand.u32 4294901760, %v29_v0  ;;  %v135_v4 = vand.u32 4294901760, %v30_v1  ;;  %v14_v5 = vld [vmem:[%s3737_s1 + $0x8] sm:$0xff]  ;;  %v32_v8 = vld [vmem:[%s3737_s1 + $0x98] sm:$0xff]  ;;  %v138_v10 = vand.u32 4294901760, %v31_v7 }
   0x3   :  { %v84_v6 = vand.u32 4294901760, %v13_v2  ;;  %v87_v9 = vand.u32 4294901760, %v14_v5  ;;  %v141_v11 = vand.u32 4294901760, %v32_v8  ;;  %v15_v12 = vld [vmem:[%s3737_s1 + $0x10] sm:$0xff]  ;;  %v16_v13 = vld [vmem:[%s3737_s1 + $0x18] sm:$0xff]  ;;  %v33_v18 = vld [vmem:[%s3737_s1 + $0xa0] sm:$0xff] }
   0x4   :  { %v2657_v14 = vpack.c.bf16 %v135_v4, %v132_v3  ;;  %v90_v16 = vand.u32 4294901760, %v15_v12  ;;  %v93_v17 = vand.u32 4294901760, %v16_v13  ;;  %v34_v19 = vld [vmem:[%s3737_s1 + $0xa8] sm:$0xff]  ;;  %v17_v23 = vld [vmem:[%s3737_s1 + $0x20] sm:$0xff]  ;;  %v2680_v25 = vsub.f32 %v31_v7, %v138_v10  ;;  %v35_v36 = vld [vmem:[%s3737_s1 + $0xb0] sm:$0xff] }
   0x5   :  { %v2659_v15 = vsub.f32 %v13_v2, %v84_v6  ;;  %v2667_v20 = vpack.c.bf16 %v87_v9, %v84_v6  ;;  %v2669_v21 = vsub.f32 %v14_v5, %v87_v9  ;;  %v2671_v22 = vpack.c.bf16 %v141_v11, %v138_v10  ;;  %v18_v24 = vld [vmem:[%s3737_s1 + $0x28] sm:$0xff]  ;;  %v36_v41 = vld [vmem:[%s3737_s1 + $0xb8] sm:$0xff]  ;;  %v19_v54 = vld [vmem:[%s3737_s1 + $0x30] sm:$0xff] }
   0x6   :  { %2233 = vmatprep.subr.bf16.mxu0 %v2657_v14  ;;  %v2682_v26 = vsub.f32 %v32_v8, %v141_v11  ;;  %v2684_v27 = vpack.c.bf16 %v93_v17, %v90_v16  ;;  %v144_v28 = vand.u32 4294901760, %v33_v18  ;;  %v147_v29 = vand.u32 4294901760, %v34_v19  ;;  %v20_v55 = vld [vmem:[%s3737_s1 + $0x38] sm:$0xff]  ;;  %v38_v5 = vld [vmem:[%s3737_s1 + $0xc8] sm:$0xff]  ;;  %v21_v10 = vld [vmem:[%s3737_s1 + $0x40] sm:$0xff] }
   0x7   :  { %2235 = vmatpush3.bf16.msra.mxu0 %v2667_v20  ;;  %v2687_v30 = vsub.f32 %v29_v0, %v132_v3  ;;  %v2689_v31 = vsub.f32 %v30_v1, %v135_v4  ;;  %v96_v32 = vand.u32 4294901760, %v17_v23  ;;  %v99_v33 = vand.u32 4294901760, %v18_v24  ;;  %v37_v4 = vld [vmem:[%s3737_s1 + $0xc0] sm:$0xff] }
   0x8   :  { %2237 = vmatprep.subr.bf16.mxu0 %v2671_v22  ;;  %v3756_v34 = vand.u32 4294901760, %v2659_v15  ;;  %v3754_v35 = vand.u32 4294901760, %v2669_v21  ;;  %v2697_v37 = vsub.f32 %v15_v12, %v90_v16  ;;  %v2699_v38 = vsub.f32 %v16_v13, %v93_v17 }
   0x9   :  { %v2701_v39 = vpack.c.bf16 %v147_v29, %v144_v28  ;;  %v3759_v40 = vand.u32 4294901760, %v2687_v30  ;;  %v2707_v42 = vsub.f32 %v33_v18, %v144_v28  ;;  %v2709_v43 = vsub.f32 %v34_v19, %v147_v29 }
   0xa   :  { %v3757_v44 = vand.u32 4294901760, %v2689_v31  ;;  %v2712_v45 = vpack.c.bf16 %v99_v33, %v96_v32  ;;  %v199_v47 = vsub.f32 %v2659_v15, %v3756_v34  ;;  %v206_v48 = vsub.f32 %v2669_v21, %v3754_v35 }
   0xb   :  { %2239 = vmatpush3.bf16.msra.mxu0 %v2684_v27  ;;  %v311_v46 = vsub.f32 %v2687_v30, %v3759_v40  ;;  %v150_v49 = vand.u32 4294901760, %v35_v36  ;;  %v153_v51 = vand.u32 4294901760, %v36_v41  ;;  %v3753_v52 = vand.u32 4294901760, %v2680_v25 }
   0xc   :  { %2241 = vmatprep.subr.bf16.mxu0 %v2701_v39  ;;  %v318_v50 = vsub.f32 %v2689_v31, %v3757_v44  ;;  %v3752_v53 = vand.u32 4294901760, %v2682_v26  ;;  %v2736_v57 = vsub.f32 %v17_v23, %v96_v32  ;;  %v200_v58 = vand.u32 4294901760, %v199_v47 }
   0xd   :  { %v312_v56 = vand.u32 4294901760, %v311_v46  ;;  %v207_v59 = vand.u32 4294901760, %v206_v48  ;;  %v2738_v61 = vsub.f32 %v18_v24, %v99_v33  ;;  %v2740_v62 = vpack.c.bf16 %v153_v51, %v150_v49  ;;  %v22_v24 = vld [vmem:[%s3737_s1 + $0x48] sm:$0xff] }
   0xe   :  { %v319_v60 = vand.u32 4294901760, %v318_v50  ;;  %v325_v63 = vsub.f32 %v2680_v25, %v3753_v52  ;;  %v332_v1 = vsub.f32 %v2682_v26, %v3752_v53  ;;  %v102_v2 = vand.u32 4294901760, %v19_v54 }
   0xf   :  { %2243 = vmatpush3.bf16.msra.mxu0 %v2712_v45  ;;  %v2266_v0 = vpack.c.bf16 %v207_v59, %v200_v58  ;;  %v105_v3 = vand.u32 4294901760, %v20_v55  ;;  %v3749_v8 = vand.u32 4294901760, %v2697_v37  ;;  %v3747_v9 = vand.u32 4294901760, %v2699_v38 }
  0x10   :  { %v2264_v6 = vpack.c.bf16 %v319_v60, %v312_v56  ;;  %2245 = vmatprep.subr.bf16.mxu0 %v2740_v62  ;;  %v326_v7 = vand.u32 4294901760, %v325_v63  ;;  %v2761_v11 = vsub.f32 %v35_v36, %v150_v49  ;;  %v2763_v12 = vsub.f32 %v36_v41, %v153_v51  ;;  %v40_v56 = vld [vmem:[%s3737_s1 + $0xd8] sm:$0xff]  ;;  %v23_v63 = vld [vmem:[%s3737_s1 + $0x50] sm:$0xff] }
  0x11   :  { %v333_v13 = vand.u32 4294901760, %v332_v1  ;;  %v2765_v16 = vpack.c.bf16 %v105_v3, %v102_v2  ;;  %v213_v17 = vsub.f32 %v2697_v37, %v3749_v8  ;;  %v220_v18 = vsub.f32 %v2699_v38, %v3747_v9 }
  0x12   :  { %2265 = vmatprep.subr.bf16.mxu1 %v2264_v6  ;;  %v156_v19 = vand.u32 4294901760, %v37_v4  ;;  %v159_v23 = vand.u32 4294901760, %v38_v5  ;;  %v3746_v29 = vand.u32 4294901760, %v2707_v42  ;;  %v3744_v32 = vand.u32 4294901760, %v2709_v43 }
  0x13   :  { %2267 = vmatpush3.bf16.msra.mxu1 %v2266_v0  ;;  %v2268_v28 = vpack.c.bf16 %v333_v13, %v326_v7  ;;  %2247 = vmatpush3.bf16.msra.mxu0 %v2765_v16  ;;  %v108_v33 = vand.u32 4294901760, %v21_v10  ;;  %v2779_v36 = vsub.f32 %v19_v54, %v102_v2  ;;  %v214_v41 = vand.u32 4294901760, %v213_v17  ;;  %v39_v54 = vld [vmem:[%s3737_s1 + $0xd0] sm:$0xff] }
  0x14   :  { %v221_v46 = vand.u32 4294901760, %v220_v18  ;;  %v2781_v47 = vpack.c.bf16 %v159_v23, %v156_v19  ;;  %v2783_v48 = vsub.f32 %v20_v55, %v105_v3  ;;  %v339_v49 = vsub.f32 %v2707_v42, %v3746_v29 }
  0x15   :  { %2269 = vmatprep.subr.bf16.mxu1 %v2268_v28  ;;  %v346_v50 = vsub.f32 %v2709_v43, %v3744_v32  ;;  %v111_v51 = vand.u32 4294901760, %v22_v24  ;;  %v2798_v55 = vsub.f32 %v37_v4, %v156_v19  ;;  %v3743_v59 = vand.u32 4294901760, %v2736_v57 }
  0x16   :  { %v2270_v58 = vpack.c.bf16 %v221_v46, %v214_v41  ;;  %2249 = vmatprep.subr.bf16.mxu0 %v2781_v47  ;;  %v3742_v60 = vand.u32 4294901760, %v2738_v61  ;;  %v2805_v0 = vsub.f32 %v38_v5, %v159_v23  ;;  %v340_v1 = vand.u32 4294901760, %v339_v49  ;;  %v24_v5 = vld [vmem:[%s3737_s1 + $0x58] sm:$0xff] }
  0x17   :  { %v347_v2 = vand.u32 4294901760, %v346_v50  ;;  %v2807_v3 = vpack.c.bf16 %v111_v51, %v108_v33  ;;  %v227_v4 = vsub.f32 %v2736_v57, %v3743_v59  ;;  %v162_v7 = vand.u32 4294901760, %v39_v54 }
  0x18   :  { %2271 = vmatpush3.bf16.msra.mxu1 %v2270_v58  ;;  %v234_v6 = vsub.f32 %v2738_v61, %v3742_v60  ;;  %v165_v13 = vand.u32 4294901760, %v40_v56  ;;  %v3741_v18 = vand.u32 4294901760, %v2761_v11  ;;  %v3740_v19 = vand.u32 4294901760, %v2763_v12 }
  0x19   :  { %v2272_v17 = vpack.c.bf16 %v347_v2, %v340_v1  ;;  %2251 = vmatpush3.bf16.msra.mxu0 %v2807_v3  ;;  %v114_v23 = vand.u32 4294901760, %v23_v63  ;;  %v2821_v28 = vsub.f32 %v21_v10, %v108_v33  ;;  %v228_v41 = vand.u32 4294901760, %v227_v4  ;;  %v41_v10 = vld [vmem:[%s3737_s1 + $0xe0] sm:$0xff]  ;;  %v42_v33 = vld [vmem:[%s3737_s1 + $0xe8] sm:$0xff] }
  0x1a   :  { %v235_v46 = vand.u32 4294901760, %v234_v6  ;;  %v2823_v49 = vpack.c.bf16 %v165_v13, %v162_v7  ;;  %v2825_v50 = vsub.f32 %v22_v24, %v111_v51  ;;  %v353_v58 = vsub.f32 %v2761_v11, %v3741_v18 }
  0x1b   :  { %2273 = vmatprep.subr.bf16.mxu1 %v2272_v17  ;;  %v360_v1 = vsub.f32 %v2763_v12, %v3740_v19  ;;  %v117_v2 = vand.u32 4294901760, %v24_v5  ;;  %v2840_v24 = vsub.f32 %v39_v54, %v162_v7  ;;  %v3745_v51 = vand.u32 4294901760, %v2779_v36  ;;  %v25_v17 = vld [vmem:[%s3737_s1 + $0x60] sm:$0xff] }
  0x1c   :  { %v2274_v4 = vpack.c.bf16 %v235_v46, %v228_v41  ;;  %2253 = vmatprep.subr.bf16.mxu0 %v2823_v49  ;;  %v3748_v6 = vand.u32 4294901760, %v2783_v48  ;;  %v2847_v19 = vsub.f32 %v40_v56, %v165_v13  ;;  %v354_v18 = vand.u32 4294901760, %v353_v58  ;;  %v26_v56 = vld [vmem:[%s3737_s1 + $0x68] sm:$0xff] }
  0x1d   :  { %v361_v60 = vand.u32 4294901760, %v360_v1  ;;  %v2849_v59 = vpack.c.bf16 %v117_v2, %v114_v23  ;;  %v241_v54 = vsub.f32 %v2779_v36, %v3745_v51  ;;  %v168_v41 = vand.u32 4294901760, %v41_v10 }
  0x1e   :  { %2275 = vmatpush3.bf16.msra.mxu1 %v2274_v4  ;;  %v248_v7 = vsub.f32 %v2783_v48, %v3748_v6  ;;  %v171_v46 = vand.u32 4294901760, %v42_v33  ;;  %v3751_v58 = vand.u32 4294901760, %v2798_v55  ;;  %v3750_v1 = vand.u32 4294901760, %v2805_v0 }
  0x1f   :  { %3831 = vst [vmem:[#allocation2_spill] sm:$0xff] %v2849_v59  ;;  %v2276_v13 = vpack.c.bf16 %v361_v60, %v354_v18  ;;  %2255 = vmatpush3.bf16.msra.mxu0 %v2849_v59  ;;  %v120_v4 = vand.u32 4294901760, %v25_v17  ;;  %v2863_v32 = vsub.f32 %v23_v63, %v114_v23  ;;  %v242_v51 = vand.u32 4294901760, %v241_v54  ;;  %v43_v63 = vld [vmem:[%s3737_s1 + $0xf0] sm:$0xff]  ;;  %v44_v23 = vld [vmem:[%s3737_s1 + $0xf8] sm:$0xff] }
  0x20   :  { %v249_v29 = vand.u32 4294901760, %v248_v7  ;;  %v2865_v9 = vpack.c.bf16 %v171_v46, %v168_v41  ;;  %v2867_v6 = vsub.f32 %v24_v5, %v117_v2  ;;  %v367_v60 = vsub.f32 %v2798_v55, %v3751_v58 }
  0x21   :  { %2277 = vmatprep.subr.bf16.mxu1 %v2276_v13  ;;  %v374_v18 = vsub.f32 %v2805_v0, %v3750_v1  ;;  %v123_v8 = vand.u32 4294901760, %v26_v56  ;;  %v2882_v5 = vsub.f32 %v41_v10, %v168_v41  ;;  %v3755_v2 = vand.u32 4294901760, %v2821_v28  ;;  %v27_v13 = vld [vmem:[%s3737_s1 + $0x70] sm:$0xff] }
  0x22   :  { %3832 = vst [vmem:[#allocation3_spill] sm:$0xff] %v2865_v9  ;;  %v2278_v54 = vpack.c.bf16 %v249_v29, %v242_v51  ;;  %2257 = vmatprep.subr.bf16.mxu0 %v2865_v9  ;;  %v3758_v7 = vand.u32 4294901760, %v2825_v50  ;;  %v2889_v1 = vsub.f32 %v42_v33, %v171_v46  ;;  %v368_v58 = vand.u32 4294901760, %v367_v60  ;;  %v28_v33 = vld [vmem:[%s3737_s1 + $0x78] sm:$0xff] }
  0x23   :  { %v375_v53 = vand.u32 4294901760, %v374_v18  ;;  %v2891_v52 = vpack.c.bf16 %v123_v8, %v120_v4  ;;  %v255_v29 = vsub.f32 %v2821_v28, %v3755_v2  ;;  %v174_v51 = vand.u32 4294901760, %v43_v63 }
  0x24   :  { %2279 = vmatpush3.bf16.msra.mxu1 %v2278_v54  ;;  %v262_v10 = vsub.f32 %v2825_v50, %v3758_v7  ;;  %v177_v41 = vand.u32 4294901760, %v44_v23  ;;  %v3760_v60 = vand.u32 4294901760, %v2840_v24  ;;  %v3763_v18 = vand.u32 4294901760, %v2847_v19 }
  0x25   :  { %3833 = vst [vmem:[#allocation4_spill] sm:$0xff] %v2891_v52  ;;  %v2280_v46 = vpack.c.bf16 %v375_v53, %v368_v58  ;;  %2259 = vmatpush3.bf16.msra.mxu0 %v2891_v52  ;;  %v126_v54 = vand.u32 4294901760, %v27_v13  ;;  %v2905_v35 = vsub.f32 %v25_v17, %v120_v4  ;;  %v256_v2 = vand.u32 4294901760, %v255_v29  ;;  %v11_v17 = vld [vmem:[%s3738_s0] sm:$0xff] }
  0x26   :  { %v263_v34 = vand.u32 4294901760, %v262_v10  ;;  %v2907_v44 = vpack.c.bf16 %v177_v41, %v174_v51  ;;  %v2909_v7 = vsub.f32 %v26_v56, %v123_v8  ;;  %v381_v53 = vsub.f32 %v2840_v24, %v3760_v60 }
  0x27   :  { %2281 = vmatprep.subr.bf16.mxu1 %v2280_v46  ;;  %v388_v58 = vsub.f32 %v2847_v19, %v3763_v18  ;;  %v129_v40 = vand.u32 4294901760, %v28_v33  ;;  %v2921_v29 = vsub.f32 %v43_v63, %v174_v51  ;;  %v3766_v8 = vand.u32 4294901760, %v2863_v32 }
  0x28   :  { %3834 = vst [vmem:[#allocation5_spill] sm:$0xff] %v2907_v44  ;;  %v2282_v4 = vpack.c.bf16 %v263_v34, %v256_v2  ;;  %2261 = vmatprep.subr.bf16.mxu0 %v2907_v44  ;;  %v3767_v56 = vand.u32 4294901760, %v2867_v6  ;;  %v2925_v10 = vsub.f32 %v44_v23, %v177_v41  ;;  %v382_v46 = vand.u32 4294901760, %v381_v53 }
  0x29   :  { %v389_v60 = vand.u32 4294901760, %v388_v58  ;;  %v2927_v52 = vpack.c.bf16 %v129_v40, %v126_v54  ;;  %v269_v18 = vsub.f32 %v2863_v32, %v3766_v8  ;;  %v79_v63 = vcombine.high %v11_v17, %v11_v17 }
  0x2a   :  { %2283 = vmatpush3.bf16.msra.mxu1 %v2282_v4  ;;  %v276_v34 = vsub.f32 %v2867_v6, %v3767_v56  ;;  %v2935_v2 = vand.u32 4294901760, %v11_v17  ;;  %v2938_v23 = vsub.f32 %v27_v13, %v126_v54  ;;  %v3768_v41 = vand.u32 4294901760, %v2882_v5 }
  0x2b   :  { %3835 = vst [vmem:[#allocation6_spill] sm:$0xff] %v2927_v52  ;;  %v2284_v51 = vpack.c.bf16 %v389_v60, %v382_v46  ;;  %2263 = vmatpush3.bf16.msra.mxu0 %v2927_v52  ;;  %v3771_v53 = vand.u32 4294901760, %v2889_v1  ;;  %v270_v58 = vand.u32 4294901760, %v269_v18  ;;  %v2942_v44 = vand.u32 4294901760, %v79_v63 }
  0x2c   :  { %v277_v4 = vand.u32 4294901760, %v276_v34  ;;  %v2296_v8 = vpack.c.bf16 %v2689_v31, %v2687_v30  ;;  %v395_v60 = vsub.f32 %v2882_v5, %v3768_v41  ;;  %v2953_v54 = vsub.f32 %v11_v17, %v2935_v2 }
  0x2d   :  { %3836 = vst [vmem:[#allocation7_spill] sm:$0xff] %v2942_v44  ;;  %2285 = vmatprep.subr.bf16.mxu1 %v2284_v51  ;;  %v402_v13 = vsub.f32 %v2889_v1, %v3771_v53  ;;  %v3772_v18 = vand.u32 4294901760, %v2905_v35  ;;  %v2956_v46 = vsub.f32 %v28_v33, %v129_v40  ;;  %v2959_v56 = vsub.f32 %v79_v63, %v2942_v44 }
  0x2e   :  { %3837 = vst [vmem:[#allocation8_spill] sm:$0xff] %v2953_v54  ;;  %v2286_v34 = vpack.c.bf16 %v277_v4, %v270_v58  ;;  %2297 = vmatprep.subr.bf16.mxu0 %v2296_v8  ;;  %v3773_v51 = vand.u32 4294901760, %v2909_v7  ;;  %420 = vmatprep.mubr.f32.mxu1 %v2942_v44  ;;  %v396_v41 = vand.u32 4294901760, %v395_v60  ;;  %v3776_v53 = vand.u32 4294901760, %v2953_v54 }
  0x2f   :  { %v403_v52 = vand.u32 4294901760, %v402_v13  ;;  %v283_v17 = vsub.f32 %v2905_v35, %v3772_v18  ;;  %v181_v40 = vand.u32 4294901760, %v2959_v56  ;;  %v3781_v8 = vand.u32 4294901760, %v2921_v29 }
  0x30   :  { %2287 = vmatpush3.bf16.msra.mxu1 %v2286_v34  ;;  %v290_v33 = vsub.f32 %v2909_v7, %v3773_v51  ;;  %v3782_v63 = vand.u32 4294901760, %v2925_v10  ;;  %v188_v4 = vsub.f32 %v2953_v54, %v3776_v53 }
  0x31   :  { %v2288_v58 = vpack.c.bf16 %v403_v52, %v396_v41  ;;  %v284_v60 = vand.u32 4294901760, %v283_v17  ;;  %v182_v13 = vsub.f32 %v2959_v56, %v181_v40  ;;  %v409_v34 = vsub.f32 %v2921_v29, %v3781_v8 }
  0x32   :  { %v291_v18 = vand.u32 4294901760, %v290_v33  ;;  %v416_v51 = vsub.f32 %v2925_v10, %v3782_v63  ;;  %v189_v44 = vand.u32 4294901760, %v188_v4  ;;  %v2298_v52 = vpack.c.bf16 %v2669_v21, %v2659_v15 }
  0x33   :  { %2289 = vmatprep.subr.bf16.mxu1 %v2288_v58  ;;  %v296_v41 = vand.u32 4294901760, %v2938_v23  ;;  %v303_v17 = vand.u32 4294901760, %v2956_v46  ;;  %v183_v53 = vand.u32 4294901760, %v182_v13  ;;  %v410_v33 = vand.u32 4294901760, %v409_v34 }
  0x34   :  { %v2290_v54 = vpack.c.bf16 %v291_v18, %v284_v60  ;;  %v417_v9 = vand.u32 4294901760, %v416_v51  ;;  %v2300_v8 = vpack.c.bf16 %v2682_v26, %v2680_v25  ;;  %v2302_v18 = vpack.c.bf16 %v2699_v38, %v2697_v37 }
  0x35   :  { %v297_v63 = vsub.f32 %v2938_v23, %v296_v41  ;;  %v304_v58 = vsub.f32 %v2956_v46, %v303_v17  ;;  %184 = vmatprep.mubr.f32.mxu0 %v183_v53  ;;  %v2304_v60 = vpack.c.bf16 %v2709_v43, %v2707_v42  ;;  %v2306_v34 = vpack.c.bf16 %v2738_v61, %v2736_v57 }
  0x36   :  { %2291 = vmatpush3.bf16.msra.mxu1 %v2290_v54  ;;  %v2292_v4 = vpack.c.bf16 %v417_v9, %v410_v33  ;;  %190 = vmatmul.mubr.f32.vlgmr.msra.gmra.mrb[0].mxu0 %v189_v44  ;;  %v3838_v9 = vand.u32 4294901760, %v2687_v30  ;;  %v3839_v44 = vand.u32 4294901760, %v2689_v31  ;;  %v3840_v54 = vand.u32 4294901760, %v2659_v15 }
  0x37   :  { %v298_v59 = vand.u32 4294901760, %v297_v63  ;;  %v305_v13 = vand.u32 4294901760, %v304_v58  ;;  %2299 = vmatpush3.bf16.msra.mxu0 %v2298_v52  ;;  %557 = vmatprep.mubr.f32.mxu0 %v2959_v56  ;;  %v3841_v63 = vand.u32 4294901760, %v2669_v21  ;;  %v3844_v58 = vand.u32 4294901760, %v2697_v37 }
  0x38   :  { %2293 = vmatprep.subr.bf16.mxu1 %v2292_v4  ;;  %2301 = vmatprep.subr.bf16.mxu0 %v2300_v8  ;;  %v2360_v53 = vpack.c.bf16 %v3839_v44, %v3838_v9  ;;  %v3843_v8 = vand.u32 4294901760, %v2682_v26  ;;  %v3845_v4 = vand.u32 4294901760, %v2699_v38  ;;  %v3846_v30 = vand.u32 4294901760, %v2707_v42 }
  0x39   :  { %v2294_v51 = vpack.c.bf16 %v305_v13, %v298_v59  ;;  %v2362_v52 = vpack.c.bf16 %v3841_v63, %v3840_v54  ;;  %v3842_v59 = vand.u32 4294901760, %v2680_v25  ;;  %v3847_v31 = vand.u32 4294901760, %v2709_v43 }
  0x3a   :  { %v3018_v56 = vpack.c.bf16 %v3845_v4, %v3844_v58  ;;  %v3848_v21 = vand.u32 4294901760, %v2736_v57  ;;  %v3849_v25 = vand.u32 4294901760, %v2738_v61  ;;  %v3850_v26 = vand.u32 4294901760, %v2761_v11 }
  0x3b   :  { %v2364_v33 = vpack.c.bf16 %v3843_v8, %v3842_v59  ;;  %2295 = vmatpush3.bf16.msra.mxu1 %v2294_v51  ;;  %v3024_v15 = vpack.c.bf16 %v3847_v31, %v3846_v30  ;;  %v3851_v37 = vand.u32 4294901760, %v2763_v12  ;;  %v3852_v51 = vand.u32 4294901760, %v2779_v36  ;;  %2303 = vmatpush3.bf16.msra.mxu0 %v2302_v18 }
  0x3c   :  { %v3030_v13 = vpack.c.bf16 %v3849_v25, %v3848_v21  ;;  %v3853_v42 = vand.u32 4294901760, %v2783_v48  ;;  %2329 = vmatprep.subr.bf16.mxu1 %v2657_v14  ;;  %v3854_v43 = vand.u32 4294901760, %v2798_v55  ;;  %v3855_v57 = vand.u32 4294901760, %v2805_v0  ;;  %2305 = vmatprep.subr.bf16.mxu0 %v2304_v60  ;;  %v62_v21 = vld [vmem:[%s3737_s1 + $0x188] sm:$0xff]  ;;  %v45_v25 = vld [vmem:[%s3737_s1 + $0x100] sm:$0xff] }
  0x3d   :  { %v3036_v38 = vpack.c.bf16 %v3851_v37, %v3850_v26  ;;  %v3856_v44 = vand.u32 4294901760, %v2821_v28  ;;  %v3857_v54 = vand.u32 4294901760, %v2825_v50  ;;  %v3858_v59 = vand.u32 4294901760, %v2840_v24  ;;  %v46_v26 = vld [vmem:[%s3737_s1 + $0x108] sm:$0xff] }
  0x3e   :  { %v3042_v9 = vpack.c.bf16 %v3853_v42, %v3852_v51  ;;  %v3049_v61 = vpack.c.bf16 %v3855_v57, %v3854_v43  ;;  %v3859_v8 = vand.u32 4294901760, %v2847_v19  ;;  %v2308_v18 = vpack.c.bf16 %v2763_v12, %v2761_v11  ;;  %422 = vmatmul.mubr.f32.vlgmr.msra.gmra.mrb[0].mxu1 %v2935_v2  ;;  %v3868_v51 = vld [vmem:[#allocation6_spill] sm:$0xff]  ;;  %v63_v43 = vld [vmem:[%s3737_s1 + $0x190] sm:$0xff]  ;;  %v64_v57 = vld [vmem:[%s3737_s1 + $0x198] sm:$0xff] }
  0x3f   :  { %v3055_v63 = vpack.c.bf16 %v3857_v54, %v3856_v44  ;;  %v3860_v4 = vand.u32 4294901760, %v2863_v32  ;;  %v3861_v30 = vand.u32 4294901760, %v2867_v6  ;;  %2331 = vmatpush3.bf16.msra.mxu1 %v2667_v20  ;;  %664 = vmatprep.mubr.f32.mxu1 %v181_v40  ;;  %v2310_v60 = vpack.c.bf16 %v2783_v48, %v2779_v36  ;;  %v47_v44 = vld [vmem:[%s3737_s1 + $0x110] sm:$0xff]  ;;  %v48_v54 = vld [vmem:[%s3737_s1 + $0x118] sm:$0xff] }
  0x40   :  { %v3061_v58 = vpack.c.bf16 %v3859_v8, %v3858_v59  ;;  %2307 = vmatpush3.bf16.msra.mxu0 %v2306_v34  ;;  %2333 = vmatprep.subr.bf16.mxu1 %v2671_v22  ;;  %v2312_v11 = vpack.c.bf16 %v2805_v0, %v2798_v55  ;;  %v2314_v12 = vpack.c.bf16 %v2825_v50, %v2821_v28  ;;  %v3863_v28 = vld [vmem:[#allocation3_spill] sm:$0xff]  ;;  %v3864_v50 = vld [vmem:[#allocation8_spill] sm:$0xff]  ;;  %v3866_v34 = vld [vmem:[#allocation5_spill] sm:$0xff]  ;;  %v946_v42 = vand.u32 4294901760, %v45_v25 }
  0x41   :  { %v3069_v31 = vpack.c.bf16 %v3861_v30, %v3860_v4  ;;  %2309 = vmatprep.subr.bf16.mxu0 %v2308_v18  ;;  %v2316_v40 = vpack.c.bf16 %v2847_v19, %v2840_v24  ;;  %v2318_v36 = vpack.c.bf16 %v2867_v6, %v2863_v32  ;;  %v2320_v48 = vpack.c.bf16 %v2889_v1, %v2882_v5  ;;  %v3862_v19 = vld [vmem:[#allocation2_spill] sm:$0xff]  ;;  %v3865_v24 = vld [vmem:[#allocation4_spill] sm:$0xff]  ;;  %v3137_v59 = vld [vmem:[%s3738_s0 + $0x8] sm:$0xff] }
  0x42   :  { %v2322_v55 = vpack.c.bf16 %v2909_v7, %v2905_v35  ;;  %v2324_v0 = vpack.c.bf16 %v2925_v10, %v2921_v29  ;;  %v2326_v32 = vpack.c.bf16 %v2956_v46, %v2938_v23  ;;  %v61_v6 = vld [vmem:[%s3737_s1 + $0x180] sm:$0xff]  ;;  %v1000_v8 = vand.u32 4294901760, %v63_v43  ;;  %v66_v4 = vld [vmem:[%s3737_s1 + $0x1a8] sm:$0xff] }
  0x43   :  { %2335 = vmatpush3.bf16.msra.mxu1 %v2684_v27  ;;  %v994_v37 = vand.u32 4294901760, %v61_v6  ;;  %v65_v18 = vld [vmem:[%s3737_s1 + $0x1a0] sm:$0xff]  ;;  %v3150_v30 = vand.u32 4294901760, %v3137_v59  ;;  %v50_v23 = vld [vmem:[%s3737_s1 + $0x128] sm:$0xff] }
  0x44   :  { %2311 = vmatpush3.bf16.msra.mxu0 %v2310_v60  ;;  %2337 = vmatprep.subr.bf16.mxu1 %v2701_v39  ;;  %v3870_v60 = vand.u32 4294901760, %v2882_v5 }
  0x45   :  { %2313 = vmatprep.subr.bf16.mxu0 %v2312_v11  ;;  %v3871_v11 = vand.u32 4294901760, %v2889_v1  ;;  %v952_v1 = vand.u32 4294901760, %v47_v44 }
  0x47   :  { %2339 = vmatpush3.bf16.msra.mxu1 %v2712_v45 }
  0x48   :  { %2315 = vmatpush3.bf16.msra.mxu0 %v2314_v12  ;;  %2341 = vmatprep.subr.bf16.mxu1 %v2740_v62  ;;  %v3157_v12 = vpack.c.bf16 %v3871_v11, %v3870_v60 }
  0x49   :  { %2317 = vmatprep.subr.bf16.mxu0 %v2316_v40 }
  0x4b   :  { %2343 = vmatpush3.bf16.msra.mxu1 %v2765_v16 }
  0x4c   :  { %2319 = vmatpush3.bf16.msra.mxu0 %v2318_v36  ;;  %2345 = vmatprep.subr.bf16.mxu1 %v2781_v47  ;;  %v3161_v36 = vsub.f32 %v45_v25, %v946_v42 }
  0x4d   :  { %2321 = vmatprep.subr.bf16.mxu0 %v2320_v48  ;;  %v3872_v48 = vand.u32 4294901760, %v2905_v35  ;;  %v1006_v35 = vand.u32 4294901760, %v65_v18 }
  0x4f   :  { %2347 = vmatpush3.bf16.msra.mxu1 %v2807_v3  ;;  %v3243_v11 = vsub.f32 %v65_v18, %v1006_v35 }
  0x50   :  { %2323 = vmatpush3.bf16.msra.mxu0 %v2322_v55  ;;  %2349 = vmatprep.subr.bf16.mxu1 %v2823_v49 }
  0x51   :  { %2325 = vmatprep.subr.bf16.mxu0 %v2324_v0  ;;  %v955_v0 = vand.u32 4294901760, %v48_v54 }
  0x53   :  { %2351 = vmatpush3.bf16.msra.mxu1 %v3862_v19 }
  0x54   :  { %2327 = vmatpush3.bf16.msra.mxu0 %v2326_v32  ;;  %2353 = vmatprep.subr.bf16.mxu1 %v3863_v28  ;;  %v3874_v32 = vand.u32 4294901760, %v2921_v29 }
  0x55   :  { %2361 = vmatprep.subr.bf16.mxu0 %v2360_v53  ;;  %v3867_v53 = vld [vmem:[#allocation7_spill] sm:$0xff] }
  0x57   :  { %560 = vmatmul.mubr.f32.vlgmr.msra.gmra.mrb[2].mxu0 %v3864_v50  ;;  %2355 = vmatpush3.bf16.msra.mxu1 %v3865_v24 }
  0x58   :  { %2363 = vmatpush3.bf16.msra.mxu0 %v2362_v52  ;;  %2357 = vmatprep.subr.bf16.mxu1 %v3866_v34  ;;  %v997_v52 = vand.u32 4294901760, %v62_v21 }
  0x59   :  { %2365 = vmatprep.subr.bf16.mxu0 %v2364_v33  ;;  %834 = vmatprep.mubr.f32.mxu0 %v3867_v53  ;;  %v949_v33 = vand.u32 4294901760, %v46_v26 }
  0x5a   :  { %v3159_v40 = vsub.f32 %v62_v21, %v997_v52  ;;  %v3189_v21 = vsub.f32 %v63_v43, %v1000_v8 }
  0x5b   :  { %2359 = vmatpush3.bf16.msra.mxu1 %v3868_v51  ;;  %v3172_v5 = vsub.f32 %v46_v26, %v949_v33  ;;  %v3201_v46 = vpack.c.bf16 %v949_v33, %v946_v42  ;;  %v3212_v26 = vpack.c.bf16 %v955_v0, %v952_v1  ;;  %v68_v42 = vld [vmem:[%s3737_s1 + $0x1b8] sm:$0xff] }
  0x5c   :  { %2367 = vmatpush3.bf16.msra.mxu0 %v3018_v56  ;;  %2393 = vmatprep.subr.bf16.mxu1 %v2657_v14  ;;  %v3869_v56 = vand.u32 4294901760, %v3864_v50  ;;  %v3141_v14 = vsub.f32 %v61_v6, %v994_v37  ;;  %v3875_v50 = vand.u32 4294901760, %v2925_v10  ;;  %v49_v10 = vld [vmem:[%s3737_s1 + $0x120] sm:$0xff] }
  0x5d   :  { %2369 = vmatprep.subr.bf16.mxu0 %v3024_v15  ;;  %v1003_v15 = vand.u32 4294901760, %v64_v57  ;;  %3876 = vst [vmem:[#allocation2_spill] sm:$0xff] %v3201_v46  ;;  %3878 = vst [vmem:[#allocation8_spill] sm:$0xff] %v3212_v26 }
  0x5e   :  { %668 = vmatmul.mubr.f32.vlgmr.msra.gmra.mrb[2].mxu1 %v3869_v56  ;;  %v3179_v6 = vpack.c.bf16 %v3875_v50, %v3874_v32  ;;  %v3796_v29 = vand.u32 4294901760, %v3141_v14 }
  0x5f   :  { %2395 = vmatpush3.bf16.msra.mxu1 %v2667_v20  ;;  %938 = vmatprep.mubr.f32.mxu1 %v3867_v53  ;;  %v3873_v20 = vand.u32 4294901760, %v2909_v7  ;;  %v1009_v7 = vand.u32 4294901760, %v66_v4  ;;  %v3191_v25 = vsub.f32 %v64_v57, %v1003_v15  ;;  %v67_v53 = vld [vmem:[%s3737_s1 + $0x1b0] sm:$0xff]  ;;  %v958_v57 = vand.u32 4294901760, %v49_v10 }
  0x60   :  { %2371 = vmatpush3.bf16.msra.mxu0 %v3030_v13  ;;  %2397 = vmatprep.subr.bf16.mxu1 %v2671_v22  ;;  %v3185_v22 = vpack.c.bf16 %v303_v17, %v296_v41  ;;  %v3187_v13 = vpack.c.bf16 %v997_v52, %v994_v37  ;;  %v3203_v41 = vpack.c.bf16 %v1003_v15, %v1000_v8  ;;  %v3791_v17 = vand.u32 4294901760, %v3159_v40 }
  0x61   :  { %v3170_v55 = vpack.c.bf16 %v3873_v20, %v3872_v48  ;;  %2373 = vmatprep.subr.bf16.mxu0 %v3036_v38  ;;  %v3789_v38 = vand.u32 4294901760, %v3161_v36  ;;  %v3214_v37 = vsub.f32 %v47_v44, %v952_v1  ;;  %v3787_v52 = vand.u32 4294901760, %v3172_v5 }
  0x62   :  { %3877 = vst [vmem:[#allocation3_spill] sm:$0xff] %v3203_v41  ;;  %v3223_v43 = vpack.c.bf16 %v1009_v7, %v1006_v35  ;;  %v1173_v33 = vsub.f32 %v3141_v14, %v3796_v29  ;;  %v1012_v44 = vand.u32 4294901760, %v67_v53  ;;  %v3785_v56 = vand.u32 4294901760, %v3191_v25  ;;  %v52_v35 = vld [vmem:[%s3737_s1 + $0x138] sm:$0xff] }
  0x63   :  { %2399 = vmatpush3.bf16.msra.mxu1 %v2684_v27  ;;  %v3216_v27 = vsub.f32 %v48_v54, %v955_v0  ;;  %v3786_v54 = vand.u32 4294901760, %v3189_v21  ;;  %v1061_v8 = vsub.f32 %v3161_v36, %v3789_v38  ;;  %v1015_v15 = vand.u32 4294901760, %v68_v42 }
  0x64   :  { %2375 = vmatpush3.bf16.msra.mxu0 %v3042_v9  ;;  %2401 = vmatprep.subr.bf16.mxu1 %v2701_v39  ;;  %3879 = vst [vmem:[#allocation4_spill] sm:$0xff] %v3223_v43  ;;  %v961_v9 = vand.u32 4294901760, %v50_v23  ;;  %v80_v39 = vcombine.high %v3137_v59, %v3137_v59  ;;  %v3788_v48 = vand.u32 4294901760, %v3214_v37  ;;  %v3251_v1 = vsub.f32 %v66_v4, %v1009_v7 }
  0x65   :  { %2377 = vmatprep.subr.bf16.mxu0 %v3049_v61  ;;  %v1180_v61 = vsub.f32 %v3159_v40, %v3791_v17  ;;  %v3790_v20 = vand.u32 4294901760, %v3216_v27  ;;  %v3255_v32 = vsub.f32 %v49_v10, %v958_v57  ;;  %v1174_v18 = vand.u32 4294901760, %v1173_v33 }
  0x66   :  { %v3239_v60 = vand.u32 4294901760, %v80_v39  ;;  %v3253_v0 = vpack.c.bf16 %v961_v9, %v958_v57  ;;  %v3263_v50 = vsub.f32 %v50_v23, %v961_v9  ;;  %v1194_v4 = vsub.f32 %v3191_v25, %v3785_v56  ;;  %v69_v9 = vld [vmem:[%s3737_s1 + $0x1c0] sm:$0xff] }
  0x67   :  { %2403 = vmatpush3.bf16.msra.mxu1 %v2712_v45  ;;  %v1068_v45 = vsub.f32 %v3172_v5, %v3787_v52  ;;  %v1181_v7 = vand.u32 4294901760, %v1180_v61  ;;  %v1062_v10 = vand.u32 4294901760, %v1061_v8  ;;  %v3275_v57 = vpack.c.bf16 %v1015_v15, %v1012_v44 }
  0x68   :  { %3880 = vst [vmem:[#allocation5_spill] sm:$0xff] %v3239_v60  ;;  %2379 = vmatpush3.bf16.msra.mxu0 %v3055_v63  ;;  %2405 = vmatprep.subr.bf16.mxu1 %v2740_v62  ;;  %3881 = vst [vmem:[#allocation7_spill] sm:$0xff] %v3253_v0  ;;  %v51_v62 = vld [vmem:[%s3737_s1 + $0x130] sm:$0xff]  ;;  %v3261_v63 = vsub.f32 %v80_v39, %v3239_v60  ;;  %v3277_v23 = vsub.f32 %v67_v53, %v1012_v44  ;;  %v70_v39 = vld [vmem:[%s3737_s1 + $0x1c8] sm:$0xff]  ;;  %v967_v44 = vand.u32 4294901760, %v52_v35 }
  0x69   :  { %2381 = vmatprep.subr.bf16.mxu0 %v3061_v58  ;;  %v1187_v58 = vsub.f32 %v3189_v21, %v3786_v54  ;;  %3882 = vst [vmem:[#allocation6_spill] sm:$0xff] %v3275_v57  ;;  %v1069_v33 = vand.u32 4294901760, %v1068_v45  ;;  %v1075_v61 = vsub.f32 %v3214_v37, %v3788_v48  ;;  %v1082_v53 = vsub.f32 %v3216_v27, %v3790_v20 }
  0x6a   :  { %v3795_v8 = vand.u32 4294901760, %v3243_v11  ;;  %v3793_v56 = vand.u32 4294901760, %v3251_v1  ;;  %v1195_v45 = vand.u32 4294901760, %v1194_v4  ;;  %v1018_v54 = vand.u32 4294901760, %v69_v9 }
  0x6b   :  { %2407 = vmatpush3.bf16.msra.mxu1 %v2765_v16  ;;  %v964_v16 = vand.u32 4294901760, %v51_v62  ;;  %v1021_v52 = vand.u32 4294901760, %v70_v39  ;;  %v3298_v48 = vpack.c.bf16 %v1181_v7, %v1174_v18  ;;  %v3300_v38 = vsub.f32 %v68_v42, %v1015_v15 }
  0x6c   :  { %2383 = vmatpush3.bf16.msra.mxu0 %v3069_v31  ;;  %2409 = vmatprep.subr.bf16.mxu1 %v2781_v47  ;;  %v3797_v31 = vand.u32 4294901760, %v3261_v63  ;;  %v1188_v47 = vand.u32 4294901760, %v1187_v58  ;;  %v3792_v20 = vand.u32 4294901760, %v3255_v32  ;;  %v3794_v17 = vand.u32 4294901760, %v3263_v50 }
  0x6d   :  { %2385 = vmatprep.subr.bf16.mxu0 %v3157_v12  ;;  %v53_v12 = vld [vmem:[%s3737_s1 + $0x140] sm:$0xff]  ;;  %v3309_v58 = vpack.c.bf16 %v1069_v33, %v1062_v10  ;;  %v3311_v4 = vsub.f32 %v51_v62, %v964_v16  ;;  %v1083_v18 = vand.u32 4294901760, %v1082_v53  ;;  %v3314_v42 = vpack.c.bf16 %v967_v44, %v964_v16  ;;  %v71_v16 = vld [vmem:[%s3737_s1 + $0x1d0] sm:$0xff] }
  0x6e   :  { %v1201_v15 = vsub.f32 %v3243_v11, %v3795_v8  ;;  %v1044_v62 = vsub.f32 %v3261_v63, %v3797_v31  ;;  %v3328_v7 = vpack.c.bf16 %v1195_v45, %v1188_v47  ;;  %v3332_v10 = vpack.c.bf16 %v1021_v52, %v1018_v54  ;;  %v55_v31 = vld [vmem:[%s3737_s1 + $0x150] sm:$0xff] }
  0x6f   :  { %2411 = vmatpush3.bf16.msra.mxu1 %v2807_v3  ;;  %v1076_v3 = vand.u32 4294901760, %v1075_v61  ;;  %3883 = vst [vmem:[#allocation9_spill] sm:$0xff] %v3314_v42  ;;  %v970_v33 = vand.u32 4294901760, %v53_v12  ;;  %v1089_v61 = vsub.f32 %v3255_v32, %v3792_v20  ;;  %v1096_v53 = vsub.f32 %v3263_v50, %v3794_v17 }
  0x70   :  { %2387 = vmatpush3.bf16.msra.mxu0 %v3170_v55  ;;  %2413 = vmatprep.subr.bf16.mxu1 %v2823_v49  ;;  %v1208_v55 = vsub.f32 %v3251_v1, %v3793_v56  ;;  %v54_v49 = vld [vmem:[%s3737_s1 + $0x148] sm:$0xff]  ;;  %v3798_v47 = vand.u32 4294901760, %v3300_v38  ;;  %v3353_v45 = vsub.f32 %v69_v9, %v1018_v54  ;;  %v3355_v20 = vsub.f32 %v70_v39, %v1021_v52 }
  0x71   :  { %2389 = vmatprep.subr.bf16.mxu0 %v3179_v6  ;;  %v3330_v6 = vsub.f32 %v52_v35, %v967_v44  ;;  %v72_v35 = vld [vmem:[%s3737_s1 + $0x1d8] sm:$0xff]  ;;  %v3799_v44 = vand.u32 4294901760, %v3277_v23  ;;  %v973_v56 = vand.u32 4294901760, %v54_v49  ;;  %v1202_v17 = vand.u32 4294901760, %v1201_v15 }
  0x72   :  { %v1209_v8 = vand.u32 4294901760, %v1208_v55  ;;  %v1024_v29 = vand.u32 4294901760, %v71_v16  ;;  %v1027_v54 = vand.u32 4294901760, %v72_v35  ;;  %v1090_v39 = vand.u32 4294901760, %v1089_v61 }
  0x73   :  { %2415 = vmatpush3.bf16.msra.mxu1 %v3862_v19  ;;  %v3351_v19 = vpack.c.bf16 %v1083_v18, %v1076_v3  ;;  %v3364_v3 = vsub.f32 %v53_v12, %v970_v33  ;;  %v1097_v18 = vand.u32 4294901760, %v1096_v53  ;;  %v1215_v15 = vsub.f32 %v3277_v23, %v3799_v44 }
  0x74   :  { %2391 = vmatpush3.bf16.msra.mxu0 %v3185_v22  ;;  %2417 = vmatprep.subr.bf16.mxu1 %v3863_v28  ;;  %v56_v28 = vld [vmem:[%s3737_s1 + $0x158] sm:$0xff]  ;;  %v1045_v22 = vand.u32 4294901760, %v1044_v62  ;;  %v1222_v12 = vsub.f32 %v3300_v38, %v3798_v47  ;;  %v3378_v55 = vpack.c.bf16 %v973_v56, %v970_v33  ;;  %v976_v62 = vand.u32 4294901760, %v55_v31 }
  0x75   :  { %2425 = vmatprep.subr.bf16.mxu0 %v3187_v13  ;;  %3884 = vst [vmem:[#allocation10_spill] sm:$0xff] %v3364_v3  ;;  %v979_v9 = vand.u32 4294901760, %v56_v28  ;;  %v3387_v53 = vpack.c.bf16 %v1209_v8, %v1202_v17  ;;  %v3389_v47 = vsub.f32 %v54_v49, %v973_v56  ;;  %v3391_v44 = vsub.f32 %v71_v16, %v1024_v29 }
  0x76   :  { %3885 = vst [vmem:[#allocation11_spill] sm:$0xff] %v3378_v55  ;;  %v3804_v33 = vand.u32 4294901760, %v3355_v20  ;;  %v3399_v52 = vpack.c.bf16 %v1027_v54, %v1024_v29  ;;  %v3890_v61 = vand.u32 4294901760, %v3311_v4  ;;  %v3891_v56 = vand.u32 4294901760, %v3330_v6 }
  0x77   :  { %836 = vmatmul.mubr.f32.vlgmr.msra.gmra.mrb[4].mxu0 %v2935_v2  ;;  %2419 = vmatpush3.bf16.msra.mxu1 %v3865_v24  ;;  %v3383_v24 = vld [vmem:[%s3737_s1 + $0x1e0] sm:$0xff]  ;;  %3886 = vst [vmem:[#allocation12_spill] sm:$0xff] %v3389_v47  ;;  %3887 = vst [vmem:[#allocation13_spill] sm:$0xff] %v3391_v44  ;;  %v3410_v49 = vpack.c.bf16 %v1097_v18, %v1090_v39  ;;  %v1216_v16 = vand.u32 4294901760, %v1215_v15  ;;  %v3415_v29 = vpack.c.bf16 %v979_v9, %v976_v62  ;;  %v3431_v18 = vld [vmem:[%s3737_s1 + $0x168] sm:$0xff] }
  0x78   :  { %2427 = vmatpush3.bf16.msra.mxu0 %v3201_v46  ;;  %2421 = vmatprep.subr.bf16.mxu1 %v3866_v34  ;;  %v3396_v34 = vld [vmem:[%s3737_s1 + $0x1e8] sm:$0xff]  ;;  %3888 = vst [vmem:[#allocation14_spill] sm:$0xff] %v3399_v52  ;;  %v3401_v46 = vsub.f32 %v72_v35, %v1027_v54  ;;  %v1103_v17 = vsub.f32 %v3311_v4, %v3890_v61  ;;  %v3892_v61 = vand.u32 4294901760, %v3353_v45  ;;  %v3426_v39 = vld [vmem:[%s3737_s1 + $0x160] sm:$0xff] }
  0x79   :  { %2429 = vmatprep.subr.bf16.mxu0 %v3203_v41  ;;  %1046 = vmatprep.mubr.f32.mxu0 %v1045_v22  ;;  %v1110_v8 = vsub.f32 %v3330_v6, %v3891_v56  ;;  %v1223_v41 = vand.u32 4294901760, %v1222_v12  ;;  %v3809_v22 = vand.u32 4294901760, %v3383_v24  ;;  %v3417_v35 = vsub.f32 %v55_v31, %v976_v62  ;;  %v3442_v12 = vld [vmem:[%s3737_s1 + $0x1f0] sm:$0xff]  ;;  %v3447_v62 = vld [vmem:[%s3737_s1 + $0x1f8] sm:$0xff] }
  0x7a   :  { %3889 = vst [vmem:[#allocation15_spill] sm:$0xff] %v3401_v46  ;;  %v985_v56 = vand.u32 4294901760, %v3431_v18 }
  0x7b   :  { %2423 = vmatpush3.bf16.msra.mxu1 %v3868_v51  ;;  %v1229_v51 = vsub.f32 %v3353_v45, %v3892_v61  ;;  %v3451_v61 = vsub.f32 %v56_v28, %v979_v9  ;;  %v1111_v31 = vand.u32 4294901760, %v1110_v8  ;;  %v2468_v54 = vpack.c.bf16 %v1223_v41, %v1216_v16  ;;  %v3480_v8 = vld [vmem:[%s3737_s1 + $0x178] sm:$0xff] }
  0x7c   :  { %2431 = vmatpush3.bf16.msra.mxu0 %v3212_v26  ;;  %2457 = vmatprep.subr.bf16.mxu1 %v3298_v48  ;;  %v1236_v48 = vsub.f32 %v3355_v20, %v3804_v33  ;;  %v1104_v33 = vand.u32 4294901760, %v1103_v17  ;;  %v982_v26 = vand.u32 4294901760, %v3426_v39  ;;  %v3475_v17 = vld [vmem:[%s3737_s1 + $0x170] sm:$0xff]  ;;  %v3894_v16 = vand.u32 4294901760, %v3364_v3 }
  0x7d   :  { %2433 = vmatprep.subr.bf16.mxu0 %v3223_v43  ;;  %v3458_v43 = vsub.f32 %v3383_v24, %v3809_v22  ;;  %v1230_v41 = vand.u32 4294901760, %v1229_v51  ;;  %v3896_v9 = vand.u32 4294901760, %v3391_v44 }
  0x7e   :  { %940 = vmatmul.mubr.f32.vlgmr.msra.gmra.mrb[4].mxu1 %v2935_v2  ;;  %v3893_v2 = vand.u32 4294901760, %v3396_v34  ;;  %v1117_v51 = vsub.f32 %v3364_v3, %v3894_v16  ;;  %v2470_v15 = vpack.c.bf16 %v1111_v31, %v1104_v33  ;;  %v3499_v16 = vsub.f32 %v3426_v39, %v982_v26 }
  0x7f   :  { %2459 = vmatpush3.bf16.msra.mxu1 %v3309_v58  ;;  %1282 = vmatprep.mubr.f32.mxu1 %v3239_v60  ;;  %v1243_v28 = vsub.f32 %v3391_v44, %v3896_v9  ;;  %v3897_v60 = vand.u32 4294901760, %v3401_v46  ;;  %v991_v33 = vand.u32 4294901760, %v3480_v8  ;;  %v3900_v44 = vand.u32 4294901760, %v3417_v35 }
  0x80   :  { %2435 = vmatpush3.bf16.msra.mxu0 %v3253_v0  ;;  %2461 = vmatprep.subr.bf16.mxu1 %v3328_v7  ;;  %v3468_v58 = vsub.f32 %v3396_v34, %v3893_v2  ;;  %v1237_v7 = vand.u32 4294901760, %v1236_v48  ;;  %v3895_v2 = vand.u32 4294901760, %v3389_v47  ;;  %v3901_v3 = vand.u32 4294901760, %v3451_v61 }
  0x81   :  { %2437 = vmatprep.subr.bf16.mxu0 %v3275_v57  ;;  %v1250_v0 = vsub.f32 %v3401_v46, %v3897_v60  ;;  %v3898_v60 = vand.u32 4294901760, %v3442_v12  ;;  %v1118_v57 = vand.u32 4294901760, %v1117_v51 }
  0x82   :  { %v1124_v22 = vsub.f32 %v3389_v47, %v3895_v2  ;;  %v3502_v2 = vsub.f32 %v3431_v18, %v985_v56  ;;  %v988_v47 = vand.u32 4294901760, %v3475_v17  ;;  %v3828_v9 = vand.u32 4294901760, %v3468_v58 }
  0x83   :  { %2463 = vmatpush3.bf16.msra.mxu1 %v3351_v19  ;;  %v3511_v31 = vsub.f32 %v3442_v12, %v3898_v60  ;;  %v3899_v19 = vand.u32 4294901760, %v3447_v62  ;;  %v2472_v48 = vpack.c.bf16 %v1237_v7, %v1230_v41  ;;  %v1251_v46 = vand.u32 4294901760, %v1250_v0 }
  0x84   :  { %2439 = vmatpush3.bf16.msra.mxu0 %v3314_v42  ;;  %2465 = vmatprep.subr.bf16.mxu1 %v3387_v53  ;;  %v1125_v42 = vand.u32 4294901760, %v1124_v22  ;;  %v1244_v53 = vand.u32 4294901760, %v1243_v28  ;;  %v1131_v60 = vsub.f32 %v3417_v35, %v3900_v44  ;;  %v3529_v18 = vsub.f32 %v3137_v59, %v3150_v30 }
  0x85   :  { %v3516_v39 = vsub.f32 %v3447_v62, %v3899_v19  ;;  %2441 = vmatprep.subr.bf16.mxu0 %v3332_v10  ;;  %v1138_v19 = vsub.f32 %v3451_v61, %v3901_v3  ;;  %v3533_v41 = vsub.f32 %v3475_v17, %v988_v47  ;;  %v3536_v22 = vsub.f32 %v3480_v8, %v991_v33 }
  0x86   :  { %v3902_v3 = vand.u32 4294901760, %v3458_v43  ;;  %v3903_v8 = vand.u32 4294901760, %v3383_v24  ;;  %v3904_v7 = vand.u32 4294901760, %v3396_v34  ;;  %v2474_v44 = vpack.c.bf16 %v1125_v42, %v1118_v57 }
  0x87   :  { %2467 = vmatpush3.bf16.msra.mxu1 %v3410_v49  ;;  %v1264_v49 = vsub.f32 %v3468_v58, %v3828_v9  ;;  %v1132_v0 = vand.u32 4294901760, %v1131_v60  ;;  %v1049_v9 = vand.u32 4294901760, %v3529_v18  ;;  %v3905_v28 = vand.u32 4294901760, %v3499_v16 }
  0x88   :  { %2443 = vmatpush3.bf16.msra.mxu0 %v3378_v55  ;;  %2469 = vmatprep.subr.bf16.mxu1 %v2468_v54  ;;  %v1257_v59 = vsub.f32 %v3458_v43, %v3902_v3  ;;  %v3554_v51 = vpack.c.bf16 %v3904_v7, %v3903_v8  ;;  %v3556_v54 = vpack.c.bf16 %v985_v56, %v982_v26  ;;  %v1139_v55 = vand.u32 4294901760, %v1138_v19 }
  0x89   :  { %2445 = vmatprep.subr.bf16.mxu0 %v3399_v52  ;;  %v2476_v3 = vpack.c.bf16 %v1251_v46, %v1244_v53  ;;  %v1145_v17 = vsub.f32 %v3499_v16, %v3905_v28  ;;  %v3906_v52 = vand.u32 4294901760, %v3502_v2  ;;  %v1158_v34 = vand.u32 4294901760, %v3533_v41 }
  0x8a   :  { %v1165_v26 = vand.u32 4294901760, %v3536_v22  ;;  %v1258_v46 = vand.u32 4294901760, %v1257_v59  ;;  %v1265_v57 = vand.u32 4294901760, %v1264_v49  ;;  %v3907_v42 = vand.u32 4294901760, %v3511_v31 }
  0x8b   :  { %2471 = vmatpush3.bf16.msra.mxu1 %v2470_v15  ;;  %v1152_v24 = vsub.f32 %v3502_v2, %v3906_v52  ;;  %v3908_v56 = vand.u32 4294901760, %v3516_v39  ;;  %v3909_v52 = vand.u32 4294901760, %v3442_v12  ;;  %v3910_v60 = vand.u32 4294901760, %v3447_v62 }
  0x8c   :  { %2447 = vmatpush3.bf16.msra.mxu0 %v3415_v29  ;;  %2473 = vmatprep.subr.bf16.mxu1 %v2472_v48  ;;  %v1271_v15 = vsub.f32 %v3511_v31, %v3907_v42  ;;  %v2478_v28 = vpack.c.bf16 %v1139_v55, %v1132_v0  ;;  %v1050_v48 = vsub.f32 %v3529_v18, %v1049_v9  ;;  %v1146_v59 = vand.u32 4294901760, %v1145_v17 }
  0x8d   :  { %v1278_v53 = vsub.f32 %v3516_v39, %v3908_v56  ;;  %2449 = vmatprep.subr.bf16.mxu0 %v3554_v51  ;;  %v3579_v19 = vpack.c.bf16 %v3910_v60, %v3909_v52  ;;  %v1153_v49 = vand.u32 4294901760, %v1152_v24  ;;  %v1159_v8 = vsub.f32 %v3533_v41, %v1158_v34  ;;  %v3911_v60 = vld [vmem:[#allocation2_spill] sm:$0xff] }
  0x8e   :  { %v1166_v12 = vsub.f32 %v3536_v22, %v1165_v26  ;;  %v3591_v62 = vpack.c.bf16 %v991_v33, %v988_v47  ;;  %v2480_v55 = vpack.c.bf16 %v1265_v57, %v1258_v46  ;;  %v1272_v0 = vand.u32 4294901760, %v1271_v15 }
  0x8f   :  { %2475 = vmatpush3.bf16.msra.mxu1 %v2474_v44  ;;  %v1279_v7 = vand.u32 4294901760, %v1278_v53  ;;  %v2488_v44 = vpack.c.bf16 %v3159_v40, %v3141_v14  ;;  %v1051_v17 = vand.u32 4294901760, %v1050_v48  ;;  %v2482_v24 = vpack.c.bf16 %v1153_v49, %v1146_v59  ;;  %v3913_v48 = vld [vmem:[#allocation3_spill] sm:$0xff] }
  0x90   :  { %2451 = vmatpush3.bf16.msra.mxu0 %v3556_v54  ;;  %2477 = vmatprep.subr.bf16.mxu1 %v2476_v3  ;;  %v1160_v42 = vand.u32 4294901760, %v1159_v8  ;;  %v1167_v56 = vand.u32 4294901760, %v1166_v12  ;;  %v2490_v47 = vpack.c.bf16 %v3172_v5, %v3161_v36  ;;  %v2492_v3 = vpack.c.bf16 %v3191_v25, %v3189_v21  ;;  %v3914_v8 = vld [vmem:[#allocation8_spill] sm:$0xff] }
  0x91   :  { %2453 = vmatprep.subr.bf16.mxu0 %v3579_v19  ;;  %v2484_v33 = vpack.c.bf16 %v1279_v7, %v1272_v0  ;;  %v2494_v57 = vpack.c.bf16 %v3216_v27, %v3214_v37  ;;  %v2496_v15 = vpack.c.bf16 %v3251_v1, %v3243_v11  ;;  %v2498_v53 = vpack.c.bf16 %v3263_v50, %v3255_v32  ;;  %v3915_v12 = vld [vmem:[#allocation4_spill] sm:$0xff] }
  0x92   :  { %v2486_v46 = vpack.c.bf16 %v1167_v56, %v1160_v42  ;;  %v2500_v52 = vpack.c.bf16 %v3300_v38, %v3277_v23  ;;  %v2502_v59 = vpack.c.bf16 %v3330_v6, %v3311_v4  ;;  %v2504_v49 = vpack.c.bf16 %v3355_v20, %v3353_v45  ;;  %v3917_v0 = vld [vmem:[#allocation12_spill] sm:$0xff]  ;;  %v3921_v42 = vld [vmem:[#allocation6_spill] sm:$0xff] }
  0x93   :  { %2479 = vmatpush3.bf16.msra.mxu1 %v2478_v28  ;;  %v3912_v28 = vand.u32 4294901760, %v3261_v63  ;;  %v2510_v56 = vpack.c.bf16 %v3451_v61, %v3417_v35 }
  0x94   :  { %2455 = vmatpush3.bf16.msra.mxu0 %v3591_v62  ;;  %2481 = vmatprep.subr.bf16.mxu1 %v2480_v55  ;;  %v3916_v55 = vld [vmem:[#allocation10_spill] sm:$0xff] }
  0x95   :  { %2489 = vmatprep.subr.bf16.mxu0 %v2488_v44  ;;  %v2506_v7 = vpack.c.bf16 %v3917_v0, %v3916_v55  ;;  %v3919_v44 = vld [vmem:[#allocation15_spill] sm:$0xff] }
  0x97   :  { %1052 = vmatmul.mubr.f32.vlgmr.msra.gmra.mrb[6].mxu0 %v1051_v17  ;;  %2483 = vmatpush3.bf16.msra.mxu1 %v2482_v24  ;;  %v3920_v24 = vld [vmem:[#allocation7_spill] sm:$0xff] }
  0x98   :  { %2491 = vmatpush3.bf16.msra.mxu0 %v2490_v47  ;;  %2485 = vmatprep.subr.bf16.mxu1 %v2484_v33  ;;  %v2512_v47 = vpack.c.bf16 %v3468_v58, %v3458_v43  ;;  %v3922_v33 = vld [vmem:[#allocation9_spill] sm:$0xff] }
  0x99   :  { %2493 = vmatprep.subr.bf16.mxu0 %v2492_v3  ;;  %1419 = vmatprep.mubr.f32.mxu0 %v3261_v63  ;;  %v3918_v63 = vld [vmem:[#allocation13_spill] sm:$0xff]  ;;  %v2514_v3 = vpack.c.bf16 %v3502_v2, %v3499_v16 }
  0x9a   :  { %v2508_v17 = vpack.c.bf16 %v3919_v44, %v3918_v63 }
  0x9b   :  { %2487 = vmatpush3.bf16.msra.mxu1 %v2486_v46  ;;  %v2516_v46 = vpack.c.bf16 %v3516_v39, %v3511_v31 }
  0x9c   :  { %2495 = vmatpush3.bf16.msra.mxu0 %v2494_v57  ;;  %2521 = vmatprep.subr.bf16.mxu1 %v3187_v13  ;;  %v3923_v57 = vld [vmem:[#allocation11_spill] sm:$0xff] }
  0x9d   :  { %2497 = vmatprep.subr.bf16.mxu0 %v2496_v15  ;;  %v3924_v15 = vld [vmem:[#allocation14_spill] sm:$0xff] }
  0x9e   :  { %1284 = vmatmul.mubr.f32.vlgmr.msra.gmra.mrb[6].mxu1 %v3150_v30 }
  0x9f   :  { %2523 = vmatpush3.bf16.msra.mxu1 %v3911_v60  ;;  %1526 = vmatprep.mubr.f32.mxu1 %v3912_v28  ;;  %v3926_v28 = vand.u32 4294901760, %v3159_v40  ;;  %v3932_v40 = vand.u32 4294901760, %v3216_v27  ;;  %v3938_v27 = vand.u32 4294901760, %v3277_v23 }
  0xa0   :  { %2499 = vmatpush3.bf16.msra.mxu0 %v2498_v53  ;;  %2525 = vmatprep.subr.bf16.mxu1 %v3913_v48  ;;  %v2518_v53 = vpack.c.bf16 %v3536_v22, %v3533_v41 }
  0xa1   :  { %2501 = vmatprep.subr.bf16.mxu0 %v2500_v52  ;;  %v3925_v52 = vand.u32 4294901760, %v3141_v14  ;;  %v3931_v14 = vand.u32 4294901760, %v3214_v37  ;;  %v3937_v37 = vand.u32 4294901760, %v3263_v50  ;;  %v3942_v50 = vand.u32 4294901760, %v3353_v45 }
  0xa2   :  { %v3949_v45 = vand.u32 4294901760, %v3451_v61  ;;  %v3955_v61 = vand.u32 4294901760, %v3516_v39 }
  0xa3   :  { %2527 = vmatpush3.bf16.msra.mxu1 %v3914_v8 }
  0xa4   :  { %2503 = vmatpush3.bf16.msra.mxu0 %v2502_v59  ;;  %2529 = vmatprep.subr.bf16.mxu1 %v3915_v12  ;;  %v2552_v59 = vpack.c.bf16 %v3926_v28, %v3925_v52 }
  0xa5   :  { %2505 = vmatprep.subr.bf16.mxu0 %v2504_v49  ;;  %v3927_v49 = vand.u32 4294901760, %v3161_v36  ;;  %v2558_v36 = vpack.c.bf16 %v3932_v40, %v3931_v14 }
  0xa7   :  { %2531 = vmatpush3.bf16.msra.mxu1 %v3920_v24 }
  0xa8   :  { %2507 = vmatpush3.bf16.msra.mxu0 %v2506_v7  ;;  %2533 = vmatprep.subr.bf16.mxu1 %v3921_v42  ;;  %v3928_v7 = vand.u32 4294901760, %v3172_v5  ;;  %v3933_v5 = vand.u32 4294901760, %v3243_v11  ;;  %v3939_v11 = vand.u32 4294901760, %v3300_v38  ;;  %v3943_v38 = vand.u32 4294901760, %v3355_v20 }
  0xa9   :  { %2509 = vmatprep.subr.bf16.mxu0 %v2508_v17  ;;  %v3948_v20 = vand.u32 4294901760, %v3417_v35  ;;  %v3954_v35 = vand.u32 4294901760, %v3511_v31 }
  0xaa   :  { %v2554_v17 = vpack.c.bf16 %v3928_v7, %v3927_v49  ;;  %v2564_v28 = vpack.c.bf16 %v3939_v11, %v3938_v27  ;;  %v2568_v23 = vpack.c.bf16 %v3943_v38, %v3942_v50 }
  0xab   :  { %2535 = vmatpush3.bf16.msra.mxu1 %v3922_v33 }
  0xac   :  { %2511 = vmatpush3.bf16.msra.mxu0 %v2510_v56  ;;  %2537 = vmatprep.subr.bf16.mxu1 %v3332_v10  ;;  %v3929_v56 = vand.u32 4294901760, %v3189_v21  ;;  %v3934_v21 = vand.u32 4294901760, %v3251_v1  ;;  %v3941_v1 = vand.u32 4294901760, %v3330_v6  ;;  %v3947_v6 = vand.u32 4294901760, %v3919_v44 }
  0xad   :  { %2513 = vmatprep.subr.bf16.mxu0 %v2512_v47  ;;  %v3930_v47 = vand.u32 4294901760, %v3191_v25  ;;  %v3935_v25 = vld [vmem:[#allocation5_spill] sm:$0xff]  ;;  %v3953_v44 = vand.u32 4294901760, %v3502_v2 }
  0xaf   :  { %2539 = vmatpush3.bf16.msra.mxu1 %v3923_v57 }
  0xb0   :  { %2515 = vmatpush3.bf16.msra.mxu0 %v2514_v3  ;;  %2541 = vmatprep.subr.bf16.mxu1 %v3924_v15  ;;  %v2556_v3 = vpack.c.bf16 %v3930_v47, %v3929_v56 }
  0xb1   :  { %2517 = vmatprep.subr.bf16.mxu0 %v2516_v46  ;;  %v2560_v46 = vpack.c.bf16 %v3934_v21, %v3933_v5 }
  0xb3   :  { %2543 = vmatpush3.bf16.msra.mxu1 %v3415_v29 }
  0xb4   :  { %2519 = vmatpush3.bf16.msra.mxu0 %v2518_v53  ;;  %2545 = vmatprep.subr.bf16.mxu1 %v3554_v51  ;;  %v3936_v53 = vand.u32 4294901760, %v3255_v32 }
  0xb5   :  { %2553 = vmatprep.subr.bf16.mxu0 %v2552_v59 }
  0xb6   :  { %v2562_v52 = vpack.c.bf16 %v3937_v37, %v3936_v53 }
  0xb7   :  { %1422 = vmatmul.mubr.f32.vlgmr.msra.gmra.mrb[8].mxu0 %v3529_v18  ;;  %2547 = vmatpush3.bf16.msra.mxu1 %v3556_v54  ;;  %v3944_v18 = vand.u32 4294901760, %v3916_v55  ;;  %v3951_v55 = vand.u32 4294901760, %v3468_v58 }
  0xb8   :  { %2555 = vmatpush3.bf16.msra.mxu0 %v2554_v17  ;;  %2549 = vmatprep.subr.bf16.mxu1 %v3579_v19 }
  0xb9   :  { %2557 = vmatprep.subr.bf16.mxu0 %v2556_v3  ;;  %1696 = vmatprep.mubr.f32.mxu0 %v3935_v25 }
  0xbb   :  { %2551 = vmatpush3.bf16.msra.mxu1 %v3591_v62 }
  0xbc   :  { %2559 = vmatpush3.bf16.msra.mxu0 %v2558_v36  ;;  %2585 = vmatprep.subr.bf16.mxu1 %v3187_v13  ;;  %v3940_v13 = vand.u32 4294901760, %v3311_v4  ;;  %v3946_v4 = vand.u32 4294901760, %v3918_v63  ;;  %v3952_v63 = vand.u32 4294901760, %v3499_v16 }
  0xbd   :  { %2561 = vmatprep.subr.bf16.mxu0 %v2560_v46 }
  0xbe   :  { %1530 = vmatmul.mubr.f32.vlgmr.msra.gmra.mrb[8].mxu1 %v1049_v9  ;;  %v2566_v32 = vpack.c.bf16 %v3941_v1, %v3940_v13  ;;  %v3945_v9 = vand.u32 4294901760, %v3917_v0 }
  0xbf   :  { %2587 = vmatpush3.bf16.msra.mxu1 %v3911_v60  ;;  %1800 = vmatprep.mubr.f32.mxu1 %v3935_v25 }
  0xc0   :  { %2563 = vmatpush3.bf16.msra.mxu0 %v2562_v52  ;;  %2589 = vmatprep.subr.bf16.mxu1 %v3913_v48  ;;  %v2570_v60 = vpack.c.bf16 %v3945_v9, %v3944_v18  ;;  %v2572_v48 = vpack.c.bf16 %v3947_v6, %v3946_v4 }
  0xc1   :  { %2565 = vmatprep.subr.bf16.mxu0 %v2564_v28 }
  0xc3   :  { %2591 = vmatpush3.bf16.msra.mxu1 %v3914_v8  ;;  %v2574_v8 = vpack.c.bf16 %v3949_v45, %v3948_v20 }
  0xc4   :  { %2567 = vmatpush3.bf16.msra.mxu0 %v2566_v32  ;;  %2593 = vmatprep.subr.bf16.mxu1 %v3915_v12  ;;  %v3950_v12 = vand.u32 4294901760, %v3458_v43  ;;  %v2582_v43 = vpack.c.bf16 %v1165_v26, %v1158_v34 }
  0xc5   :  { %2569 = vmatprep.subr.bf16.mxu0 %v2568_v23 }
  0xc6   :  { %v2576_v0 = vpack.c.bf16 %v3951_v55, %v3950_v12 }
  0xc7   :  { %2595 = vmatpush3.bf16.msra.mxu1 %v3920_v24  ;;  %v2578_v24 = vpack.c.bf16 %v3953_v44, %v3952_v63 }
  0xc8   :  { %2571 = vmatpush3.bf16.msra.mxu0 %v2570_v60  ;;  %2597 = vmatprep.subr.bf16.mxu1 %v3921_v42  ;;  %v2580_v42 = vpack.c.bf16 %v3955_v61, %v3954_v35 }
  0xc9   :  { %2573 = vmatprep.subr.bf16.mxu0 %v2572_v48 }
  0xcb   :  { %2599 = vmatpush3.bf16.msra.mxu1 %v3922_v33 }
  0xcc   :  { %2575 = vmatpush3.bf16.msra.mxu0 %v2574_v8  ;;  %2601 = vmatprep.subr.bf16.mxu1 %v3332_v10 }
  0xcd   :  { %2577 = vmatprep.subr.bf16.mxu0 %v2576_v0 }
  0xcf   :  { %2603 = vmatpush3.bf16.msra.mxu1 %v3923_v57 }
  0xd0   :  { %2579 = vmatpush3.bf16.msra.mxu0 %v2578_v24  ;;  %2605 = vmatprep.subr.bf16.mxu1 %v3924_v15 }
  0xd1   :  { %2581 = vmatprep.subr.bf16.mxu0 %v2580_v42 }
  0xd3   :  { %2607 = vmatpush3.bf16.msra.mxu1 %v3415_v29 }
  0xd4   :  { %2583 = vmatpush3.bf16.msra.mxu0 %v2582_v43  ;;  %2609 = vmatprep.subr.bf16.mxu1 %v3554_v51 }
  0xd7   :  { %1698 = vmatmul.mubr.f32.vlgmr.msra.gmra.mrb[10].mxu0 %v3150_v30  ;;  %2611 = vmatpush3.bf16.msra.mxu1 %v3556_v54 }
  0xd8   :  { %2613 = vmatprep.subr.bf16.mxu1 %v3579_v19 }
  0xdb   :  { %2615 = vmatpush3.bf16.msra.mxu1 %v3591_v62 }
  0xde   :  { %1802 = vmatmul.mubr.f32.vlgmr.msra.gmra.mrb[10].mxu1 %v3150_v30 }
 0x109   :  { %v1844_v10 = vpop.f32.mrb[0].mxu0 }
 0x10a   :  { %v1845_v58 = vpop.f32.mrb[1].mxu0 }
 0x10b   :  { %v1846_v16 = vadd.f32 %v1845_v58, %v1844_v10 }
 0x111   :  { %v1879_v2 = vpop.f32.mrb[0].mxu1 }
 0x112   :  { %v1880_v31 = vpop.f32.mrb[1].mxu1 }
 0x113   :  { %v1881_v39 = vadd.f32 %v1880_v31, %v1879_v2 }
 0x115   :  { %v424_v29 = vadd.f32 %v1881_v39, %v1846_v16 }
 0x12a   :  { %v1914_v41 = vpop.f32.mrb[2].mxu0 }
 0x12b   :  { %v1915_v22 = vpop.f32.mrb[3].mxu0 }
 0x12c   :  { %v1916_v51 = vadd.f32 %v1915_v22, %v1914_v41 }
 0x12e   :  { %v562_v34 = vadd.f32 %v1916_v51, %v424_v29 }
 0x131   :  { %v1949_v26 = vpop.f32.mrb[2].mxu1 }
 0x132   :  { %v1950_v33 = vpop.f32.mrb[3].mxu1 }
 0x133   :  { %v1951_v54 = vadd.f32 %v1950_v33, %v1949_v26 }
 0x135   :  { %v670_v57 = vadd.f32 %v1951_v54, %v562_v34 }
 0x14a   :  { %v1984_v19 = vpop.f32.mrb[4].mxu0 }
 0x14b   :  { %v1985_v15 = vpop.f32.mrb[5].mxu0 }
 0x14c   :  { %v1986_v62 = vadd.f32 %v1985_v15, %v1984_v19 }
 0x14e   :  { %v838_v59 = vadd.f32 %v1986_v62, %v670_v57 }
 0x151   :  { %v2019_v30 = vpop.f32.mrb[4].mxu1 }
 0x152   :  { %v2020_v49 = vpop.f32.mrb[5].mxu1 }
 0x153   :  { %v2021_v7 = vadd.f32 %v2020_v49, %v2019_v30 }
 0x155   :  { %v942_v17 = vadd.f32 %v2021_v7, %v838_v59 }
 0x16a   :  { %v2054_v56 = vpop.f32.mrb[6].mxu0 }
 0x16b   :  { %v2055_v47 = vpop.f32.mrb[7].mxu0 }
 0x16c   :  { %v2056_v3 = vadd.f32 %v2055_v47, %v2054_v56 }
 0x16e   :  { %v1054_v14 = vadd.f32 %v2056_v3, %v942_v17 }
 0x171   :  { %v2089_v40 = vpop.f32.mrb[6].mxu1 }
 0x172   :  { %v2090_v36 = vpop.f32.mrb[7].mxu1 }
 0x173   :  { %v2091_v5 = vadd.f32 %v2090_v36, %v2089_v40 }
 0x175   :  { %v1286_v21 = vadd.f32 %v2091_v5, %v1054_v14 }
 0x18a   :  { %v2124_v46 = vpop.f32.mrb[8].mxu0 }
 0x18b   :  { %v2125_v25 = vpop.f32.mrb[9].mxu0 }
 0x18c   :  { %v2126_v53 = vadd.f32 %v2125_v25, %v2124_v46 }
 0x18e   :  { %v1424_v37 = vadd.f32 %v2126_v53, %v1286_v21 }
 0x191   :  { %v2159_v52 = vpop.f32.mrb[8].mxu1 }
 0x192   :  { %v2160_v27 = vpop.f32.mrb[9].mxu1 }
 0x193   :  { %v2161_v11 = vadd.f32 %v2160_v27, %v2159_v52 }
 0x195   :  { %v1532_v28 = vadd.f32 %v2161_v11, %v1424_v37 }
 0x1aa   :  { %v2194_v13 = vpop.f32.mrb[10].mxu0 }
 0x1ab   :  { %v2195_v1 = vpop.f32.mrb[11].mxu0 }
 0x1ac   :  { %v2196_v32 = vadd.f32 %v2195_v1, %v2194_v13 }
 0x1ae   :  { %v1700_v50 = vadd.f32 %v2196_v32, %v1532_v28 }
 0x1b1   :  { %v2229_v38 = vpop.f32.mrb[10].mxu1 }
 0x1b2   :  { %v2230_v23 = vpop.f32.mrb[11].mxu1 }
 0x1b3   :  { %v2231_v18 = vadd.f32 %v2230_v23, %v2229_v38 }
 0x1b5   :  { %v1804_v9 = vadd.f32 %v2231_v18, %v1700_v50 }
 0x1b7   :  { %1807 = vst [vmem:[%s3739_s2] sm:$0xf] %v1804_v9 }

</bundles_post_ra>
